<compile_context>
chip_gen: v7x
topology: tpu7x:2x2x1
jax: 0.10.0
libtpu: 0.0.40
codegen_flags: <defaults>
</compile_context>

<pallas_src>
import jax
import jax.numpy as jnp
from jax.experimental import pallas as pl
from jax.experimental.pallas import tpu as pltpu


def se_kernel(x_ref, w1_ref, b1_ref, w2_ref, b2_ref, o_ref):
    # x_ref block: (B_TILE, HW, C), channels-last.
    xb = x_ref[...]                                            # input dtype

    # ---- squeeze: global average pool over the spatial (sublane) axis ----
    # Accumulate in f32 for accuracy regardless of input dtype.
    pooled = jnp.mean(xb.astype(jnp.float32), axis=1)          # (B_TILE, C)

    # ---- excitation: FC -> ReLU -> FC -> Sigmoid (batched over B_TILE) ----
    h = jnp.dot(pooled, w1_ref[...], preferred_element_type=jnp.float32) + b1_ref[...]
    h = jnp.maximum(h, 0.0)                                    # (B_TILE, Cr)
    s = jnp.dot(h, w2_ref[...], preferred_element_type=jnp.float32) + b2_ref[...]
    s = jax.nn.sigmoid(s)                                      # (B_TILE, C)

    # ---- scale: broadcast the per-channel gate over sublanes ----
    # Multiply in the input dtype (no second upcast of xb); gate is already
    # laid out lane-dense, so no XLU relayout is needed.
    o_ref[...] = xb * s.astype(xb.dtype)[:, None, :]


def _pick_b_tile(B, HW, C, itemsize, tile_budget_bytes=24 << 20):
    """Largest batch tile that (a) divides B, (b) keeps ~4x (in+out double
    buffering) the block under the VMEM budget, preferring an even grid length
    so both TensorCores on v7x get work."""
    per_image = HW * C * itemsize
    max_tile = max(1, tile_budget_bytes // (4 * per_image))
    divisors = [d for d in range(1, B + 1) if B % d == 0 and d <= max_tile]
    if not divisors:
        return 1
    even_grid = [d for d in divisors if (B // d) % 2 == 0]
    return max(even_grid) if even_grid else max(divisors)


def se_layer(x, w1, b1, w2, b2):
    """x: (B, C, H, W) NCHW (matching PyTorch).
    w1: (C, C//r), b1: (1, C//r), w2: (C//r, C), b2: (1, C)  (weights stored
    pre-transposed so the kernel does plain y @ w)."""
    B, C, H, W = x.shape
    HW = H * W
    Cr = w1.shape[1]
    itemsize = x.dtype.itemsize

    # Channels-last presentation: (B, HW, C).  C lands on the lane axis.
    x_cl = jnp.transpose(x, (0, 2, 3, 1)).reshape(B, HW, C)

    b_tile = _pick_b_tile(B, HW, C, itemsize)
    grid = (B // b_tile,)

    # VMEM budget: double-buffered input + output block, plus weights.
    block_bytes = 4 * b_tile * HW * C * itemsize
    weight_bytes = 2 * sum(a.size * a.dtype.itemsize for a in (w1, b1, w2, b2))
    vmem_limit = int(min(max(block_bytes + weight_bytes + (4 << 20), 32 << 20), 48 << 20))

    # Purely HBM-bandwidth bound: one read + one write of x, tiny FLOPs.
    bytes_accessed = 2 * B * HW * C * itemsize + sum(
        a.size * a.dtype.itemsize for a in (w1, b1, w2, b2))
    flops = 4 * B * C * Cr + 2 * B * HW * C
    cost = pl.CostEstimate(flops=flops, transcendentals=B * C,
                           bytes_accessed=bytes_accessed)

    out_cl = pl.pallas_call(
        se_kernel,
        out_shape=jax.ShapeDtypeStruct((B, HW, C), x.dtype),
        grid_spec=pltpu.PrefetchScalarGridSpec(
            num_scalar_prefetch=0,
            grid=grid,
            in_specs=[
                pl.BlockSpec((b_tile, HW, C), lambda b: (b, 0, 0)),
                pl.BlockSpec((C, Cr), lambda b: (0, 0)),
                pl.BlockSpec((1, Cr), lambda b: (0, 0)),
                pl.BlockSpec((Cr, C), lambda b: (0, 0)),
                pl.BlockSpec((1, C), lambda b: (0, 0)),
            ],
            out_specs=pl.BlockSpec((b_tile, HW, C), lambda b: (b, 0, 0)),
        ),
        compiler_params=pltpu.CompilerParams(
            dimension_semantics=("parallel",),
            vmem_limit_bytes=vmem_limit),
        cost_estimate=cost,
    )(x_cl, w1, b1, w2, b2)

    # Back to NCHW.
    return jnp.transpose(out_cl.reshape(B, H, W, C), (0, 3, 1, 2))


def se_ref(x, w1, b1, w2, b2):
    """Pure-JAX reference matching the PyTorch forward."""
    y = jnp.mean(x, axis=(2, 3))                  # (B, C)  AdaptiveAvgPool2d(1)
    h = jnp.maximum(y @ w1 + b1, 0.0)             # Linear + ReLU
    s = jax.nn.sigmoid(h @ w2 + b2)               # Linear + Sigmoid
    return x * s[:, :, None, None]                # (B, C, 1, 1) broadcast


if __name__ == "__main__":
    B, C, H, W = 2, 16, 16, 16
    reduction = 8
    Cr = C // reduction

    key = jax.random.PRNGKey(0)
    kx, k1, kb1, k2, kb2 = jax.random.split(key, 5)

    x = jax.random.normal(kx, (B, C, H, W), dtype=jnp.float32)

    # PyTorch Linear weights are (out, in); we store them transposed as
    # (in, out) for y @ w.
    w1 = jax.random.normal(k1, (C, Cr), dtype=jnp.float32) * 0.25
    b1 = jax.random.normal(kb1, (1, Cr), dtype=jnp.float32) * 0.1
    w2 = jax.random.normal(k2, (Cr, C), dtype=jnp.float32) * 0.25
    b2 = jax.random.normal(kb2, (1, C), dtype=jnp.float32) * 0.1

    out = se_layer(x, w1, b1, w2, b2)
    jax.block_until_ready(out)

    ref = se_ref(x, w1, b1, w2, b2)
    assert out.shape == (B, C, H, W)
    assert jnp.allclose(out, ref, atol=1e-5, rtol=1e-5), "mismatch vs reference"

    print("KERNEL_OK")
</pallas_src>

<mosaic_0001>
module attributes {stable_mosaic.version = 11 : i64} {
  func.func @se_kernel(%arg0: i32, %arg1: memref<1x256x16xf32, #tpu.memory_space<vmem>>, %arg2: memref<16x2xf32, #tpu.memory_space<vmem>>, %arg3: memref<1x2xf32, #tpu.memory_space<vmem>>, %arg4: memref<2x16xf32, #tpu.memory_space<vmem>>, %arg5: memref<1x16xf32, #tpu.memory_space<vmem>>, %arg6: memref<1x256x16xf32, #tpu.memory_space<vmem>>) attributes {dimension_semantics = [#tpu.dimension_semantics<parallel>], iteration_bounds = array<i64: 2>, scalar_prefetch = 0 : i64, scratch_operands = 0 : i64, tpu.core_type = #tpu.core_type<tc>, window_params = [{transform_indices = @transform_0, window_bounds = array<i64: 1, 256, 16>}, {pipeline_mode = #tpu.pipeline_mode<synchronous>, transform_indices = @transform_1, window_bounds = array<i64: 16, 2>}, {pipeline_mode = #tpu.pipeline_mode<synchronous>, transform_indices = @transform_2, window_bounds = array<i64: 1, 2>}, {pipeline_mode = #tpu.pipeline_mode<synchronous>, transform_indices = @transform_3, window_bounds = array<i64: 2, 16>}, {pipeline_mode = #tpu.pipeline_mode<synchronous>, transform_indices = @transform_4, window_bounds = array<i64: 1, 16>}, {transform_indices = @transform_5, window_bounds = array<i64: 1, 256, 16>}]} {
    %c0 = arith.constant 0 : index
    %c0_0 = arith.constant 0 : index
    %c0_1 = arith.constant 0 : index
    %0 = vector.load %arg1[%c0, %c0_0, %c0_1] : memref<1x256x16xf32, #tpu.memory_space<vmem>>, vector<1x256x16xf32>
    %cst = arith.constant dense<0.000000e+00> : vector<1x16xf32>
    %1 = vector.multi_reduction <add>, %0, %cst [1] : vector<1x256x16xf32> to vector<1x16xf32>
    %cst_2 = arith.constant 2.560000e+02 : f32
    %2 = vector.broadcast %cst_2 : f32 to vector<1x16xf32>
    %3 = arith.divf %1, %2 : vector<1x16xf32>
    %c0_3 = arith.constant 0 : index
    %c0_4 = arith.constant 0 : index
    %4 = vector.load %arg2[%c0_3, %c0_4] : memref<16x2xf32, #tpu.memory_space<vmem>>, vector<16x2xf32>
    %cst_5 = arith.constant dense<0.000000e+00> : vector<1x2xf32>
    %5 = tpu.matmul %3, %4, %cst_5 {dimension_numbers = #tpu.dot_dimension_numbers<[1], [0], [0], [1], [0, 0, 1, 1], [], []>} : vector<1x16xf32>, vector<16x2xf32>, vector<1x2xf32> -> vector<1x2xf32>
    %c0_6 = arith.constant 0 : index
    %c0_7 = arith.constant 0 : index
    %6 = vector.load %arg3[%c0_6, %c0_7] : memref<1x2xf32, #tpu.memory_space<vmem>>, vector<1x2xf32>
    %7 = arith.addf %5, %6 : vector<1x2xf32>
    %cst_8 = arith.constant 0.000000e+00 : f32
    %8 = vector.broadcast %cst_8 : f32 to vector<1x2xf32>
    %9 = arith.maximumf %7, %8 : vector<1x2xf32>
    %c0_9 = arith.constant 0 : index
    %c0_10 = arith.constant 0 : index
    %10 = vector.load %arg4[%c0_9, %c0_10] : memref<2x16xf32, #tpu.memory_space<vmem>>, vector<2x16xf32>
    %cst_11 = arith.constant dense<0.000000e+00> : vector<1x16xf32>
    %11 = tpu.matmul %9, %10, %cst_11 {dimension_numbers = #tpu.dot_dimension_numbers<[1], [0], [0], [1], [0, 0, 1, 1], [], []>} : vector<1x2xf32>, vector<2x16xf32>, vector<1x16xf32> -> vector<1x16xf32>
    %c0_12 = arith.constant 0 : index
    %c0_13 = arith.constant 0 : index
    %12 = vector.load %arg5[%c0_12, %c0_13] : memref<1x16xf32, #tpu.memory_space<vmem>>, vector<1x16xf32>
    %13 = arith.addf %11, %12 : vector<1x16xf32>
    %14 = arith.negf %13 : vector<1x16xf32>
    %15 = math.exp %14 : vector<1x16xf32>
    %cst_14 = arith.constant 1.000000e+00 : f32
    %16 = vector.broadcast %cst_14 : f32 to vector<1x16xf32>
    %17 = arith.addf %16, %15 : vector<1x16xf32>
    %18 = arith.divf %16, %17 : vector<1x16xf32>
    %19 = vector.shape_cast %18 : vector<1x16xf32> to vector<1x1x16xf32>
    %20 = vector.broadcast %19 : vector<1x1x16xf32> to vector<1x256x16xf32>
    %21 = arith.mulf %0, %20 : vector<1x256x16xf32>
    %c0_15 = arith.constant 0 : index
    %c0_16 = arith.constant 0 : index
    %c0_17 = arith.constant 0 : index
    %22 = vector.load %arg6[%c0_15, %c0_16, %c0_17] : memref<1x256x16xf32, #tpu.memory_space<vmem>>, vector<1x256x16xf32>
    tpu.vector_store %arg6[%c0_15, %c0_16, %c0_17], %21 {strides = array<i32>} : memref<1x256x16xf32, #tpu.memory_space<vmem>>, vector<1x256x16xf32>,
    return
  }
  func.func @transform_0(%arg0: i32) -> (i32, i32, i32) {
    %c0_i32 = arith.constant 0 : i32
    %c0_i32_0 = arith.constant 0 : i32
    %c0_i32_1 = arith.constant 0 : i32
    return %arg0, %c0_i32, %c0_i32_0 : i32, i32, i32
  }
  func.func @transform_1(%arg0: i32) -> (i32, i32) {
    %c0_i32 = arith.constant 0 : i32
    %c0_i32_0 = arith.constant 0 : i32
    %c0_i32_1 = arith.constant 0 : i32
    return %c0_i32, %c0_i32_0 : i32, i32
  }
  func.func @transform_2(%arg0: i32) -> (i32, i32) {
    %c0_i32 = arith.constant 0 : i32
    %c0_i32_0 = arith.constant 0 : i32
    %c0_i32_1 = arith.constant 0 : i32
    return %c0_i32, %c0_i32_0 : i32, i32
  }
  func.func @transform_3(%arg0: i32) -> (i32, i32) {
    %c0_i32 = arith.constant 0 : i32
    %c0_i32_0 = arith.constant 0 : i32
    %c0_i32_1 = arith.constant 0 : i32
    return %c0_i32, %c0_i32_0 : i32, i32
  }
  func.func @transform_4(%arg0: i32) -> (i32, i32) {
    %c0_i32 = arith.constant 0 : i32
    %c0_i32_0 = arith.constant 0 : i32
    %c0_i32_1 = arith.constant 0 : i32
    return %c0_i32, %c0_i32_0 : i32, i32
  }
  func.func @transform_5(%arg0: i32) -> (i32, i32, i32) {
    %c0_i32 = arith.constant 0 : i32
    %c0_i32_0 = arith.constant 0 : i32
    %c0_i32_1 = arith.constant 0 : i32
    return %arg0, %c0_i32, %c0_i32_0 : i32, i32, i32
  }
}

</mosaic_0001>

<bundles_post_ra>
// kernel: tpu_custom_call.1
= control target key start
LH: loop header
LB: loop body
LE: loop exit
PB: predicated region body
PF: predicated region fallthrough
CT: control target
= control target key end

     0   :  { %s708_s18 = smov 0   ;;  %s1008_s0 = inlined_call_operand.vmem [shape: f32[2,256,16], index: 0, kind: input, shape index: {}]   ;;  %s1009_s1 = inlined_call_operand.vmem [shape: f32[16,2], index: 1, kind: input, shape index: {}]   ;;  %s1010_s2 = inlined_call_operand.vmem [shape: f32[1,2], index: 2, kind: input, shape index: {}]   ;;  %s1011_s3 = inlined_call_operand.vmem [shape: f32[2,16], index: 3, kind: input, shape index: {}]   ;;  %s1012_s4 = inlined_call_operand.vmem [shape: f32[1,16], index: 4, kind: input, shape index: {}]   ;;  %s1013_s5 = inlined_call_operand.vmem [shape: f32[2,256,16], index: 5, kind: output, shape index: {}]  }
   0x1 LB: > { %s615_s19 = sadd.s32 4294967295, %s673_s18   ;;  %p619_p0 = scmp.ge.s32.totalorder %s673_s18, 1  ;;  %s673_s18 = sphi %s708_s18, %s15_s18  }
   0x2   : > { %p187_p1 = scmp.lt.s32.totalorder %s673_s18, 3 }
   0x4   : > { %p188_p2 = pnand %p619_p0, %p187_p1 }
   0x5   : > { %v329_v0 = vld [vmem:[%s1009_s1] sm:$0xff] (!%p188_p2)  ;;  %v330_v1 = vld [vmem:[%s1009_s1 + $0x8] sm:$0xff] (!%p188_p2)  ;;  %p215_p3 = scmp.lt.s32.totalorder (!%p188_p2), %s615_s19, 1  ;;  %v675_v2 = vmov (!%p188_p2), 0.0|0.0   ;;  %vm676_vm0 = vmmov (!%p188_p2), 0   ;;  %v677_v4 = vmov (!%p188_p2), 0.0  }
   0x6   : > { %191 = sbr.rel (%p188_p2) target bundleno = 571 (0x23b), region = 40  ;;  %649 = vmatprep.subr.bf16.mxu0 (!%p188_p2), %v675_v2  ;;  %v650_v3 = vpack.c.bf16 (!%p188_p2), %v330_v1, %v329_v0  ;;  %641 = vmatprep.mubr.msk.f32.mxu0 (!%p188_p2), %vm676_vm0, %v677_v4  ;;  %vm257_vm1 = vcmask (!%p188_p2), 130048   ;;  %vm412_vm2 = vcmask (!%p188_p2), 1041408   ;;  %vm408_vm3 = vcmask (!%p188_p2), 15360  }
   0x7   : > { %644 = vmatprep.subr.mxu1 (!%p188_p2), %v677_v4  ;;  %646 = vmatprep.mubr.msk.f32.mxu1 (!%p188_p2), %vm676_vm0, %v677_v4 }
   0x8   : > { %651 = vmatpush3.bf16.msra.mxu0 (!%p188_p2), %v650_v3 }
   0xd   : > { %s1015_s19 = smov (!%p215_p3, %s615_s19), 1 }
   0xe   : > { %s630_s24 = sshll.u32 %s1015_s19, 8 }
   0xf   : > { %s730_s27 = scalar_lea.vmem %s1008_s0, %s630_s24  ;;  %s907_s11 = scalar_lea.vmem %s1013_s5, %s630_s24 }
  0x10   : > { %v733_v5 = vld [vmem:[%s730_s27] sm:$0xff]  ;;  %v736_v6 = vld [vmem:[%s730_s27 + $0x8] sm:$0xff]  ;;  %v739_v7 = vld [vmem:[%s730_s27 + $0x10] sm:$0xff] }
  0x11   : > { %v742_v8 = vld [vmem:[%s730_s27 + $0x18] sm:$0xff]  ;;  %v258_v9 = vsel %vm257_vm1, %v733_v5, 0.0  ;;  %v259_v10 = vsel %vm257_vm1, %v736_v6, 0.0  ;;  %v261_v11 = vsel %vm257_vm1, %v739_v7, 0.0  ;;  %v751_v12 = vld [vmem:[%s730_s27 + $0x20] sm:$0xff]  ;;  %v756_v15 = vld [vmem:[%s730_s27 + $0x28] sm:$0xff] }
  0x12   : > { %v260_v13 = vadd.f32 %v259_v10, %v258_v9  ;;  %v263_v14 = vsel %vm257_vm1, %v742_v8, 0.0  ;;  %v265_v17 = vsel %vm257_vm1, %v751_v12, 0.0  ;;  %v761_v18 = vld [vmem:[%s730_s27 + $0x30] sm:$0xff]  ;;  %v267_v20 = vsel %vm257_vm1, %v756_v15, 0.0  ;;  %v766_v21 = vld [vmem:[%s730_s27 + $0x38] sm:$0xff]  ;;  %v771_v24 = vld [vmem:[%s730_s27 + $0x40] sm:$0xff] }
  0x13   : > { %v269_v23 = vsel %vm257_vm1, %v761_v18, 0.0  ;;  %v271_v26 = vsel %vm257_vm1, %v766_v21, 0.0  ;;  %v776_v27 = vld [vmem:[%s730_s27 + $0x48] sm:$0xff]  ;;  %v273_v29 = vsel %vm257_vm1, %v771_v24, 0.0  ;;  %v781_v30 = vld [vmem:[%s730_s27 + $0x50] sm:$0xff]  ;;  %v786_v33 = vld [vmem:[%s730_s27 + $0x58] sm:$0xff] }
  0x14   : > { %v262_v16 = vadd.f32 %v261_v11, %v260_v13  ;;  %v275_v32 = vsel %vm257_vm1, %v776_v27, 0.0  ;;  %v277_v35 = vsel %vm257_vm1, %v781_v30, 0.0  ;;  %v791_v36 = vld [vmem:[%s730_s27 + $0x60] sm:$0xff]  ;;  %v279_v38 = vsel %vm257_vm1, %v786_v33, 0.0  ;;  %v796_v39 = vld [vmem:[%s730_s27 + $0x68] sm:$0xff]  ;;  %v801_v42 = vld [vmem:[%s730_s27 + $0x70] sm:$0xff] }
  0x15   : > { %v281_v41 = vsel %vm257_vm1, %v791_v36, 0.0  ;;  %v283_v44 = vsel %vm257_vm1, %v796_v39, 0.0  ;;  %v806_v45 = vld [vmem:[%s730_s27 + $0x78] sm:$0xff]  ;;  %v285_v47 = vsel %vm257_vm1, %v801_v42, 0.0  ;;  %v811_v48 = vld [vmem:[%s730_s27 + $0x80] sm:$0xff]  ;;  %v816_v51 = vld [vmem:[%s730_s27 + $0x88] sm:$0xff] }
  0x16   : > { %v264_v19 = vadd.f32 %v263_v14, %v262_v16  ;;  %v287_v50 = vsel %vm257_vm1, %v806_v45, 0.0  ;;  %v289_v53 = vsel %vm257_vm1, %v811_v48, 0.0  ;;  %v821_v54 = vld [vmem:[%s730_s27 + $0x90] sm:$0xff]  ;;  %v291_v56 = vsel %vm257_vm1, %v816_v51, 0.0  ;;  %v826_v57 = vld [vmem:[%s730_s27 + $0x98] sm:$0xff]  ;;  %v831_v60 = vld [vmem:[%s730_s27 + $0xa0] sm:$0xff] }
  0x17   : > { %v293_v59 = vsel %vm257_vm1, %v821_v54, 0.0  ;;  %v295_v62 = vsel %vm257_vm1, %v826_v57, 0.0  ;;  %v836_v63 = vld [vmem:[%s730_s27 + $0xa8] sm:$0xff]  ;;  %v297_v1 = vsel %vm257_vm1, %v831_v60, 0.0  ;;  %v841_v2 = vld [vmem:[%s730_s27 + $0xb0] sm:$0xff]  ;;  %v846_v9 = vld [vmem:[%s730_s27 + $0xb8] sm:$0xff] }
  0x18   : > { %v266_v22 = vadd.f32 %v265_v17, %v264_v19  ;;  %v299_v4 = vsel %vm257_vm1, %v836_v63, 0.0  ;;  %v301_v11 = vsel %vm257_vm1, %v841_v2, 0.0  ;;  %v851_v13 = vld [vmem:[%s730_s27 + $0xc0] sm:$0xff]  ;;  %v303_v16 = vsel %vm257_vm1, %v846_v9, 0.0  ;;  %v856_v17 = vld [vmem:[%s730_s27 + $0xc8] sm:$0xff] }
  0x1a   : > { %v268_v25 = vadd.f32 %v267_v20, %v266_v22  ;;  %v305_v20 = vsel %vm257_vm1, %v851_v13, 0.0  ;;  %v861_v22 = vld [vmem:[%s730_s27 + $0xd0] sm:$0xff] }
  0x1c   : > { %v270_v28 = vadd.f32 %v269_v23, %v268_v25  ;;  %v307_v25 = vsel %vm257_vm1, %v856_v17, 0.0 }
  0x1e   : > { %v272_v31 = vadd.f32 %v271_v26, %v270_v28  ;;  %v866_v26 = vld [vmem:[%s730_s27 + $0xd8] sm:$0xff] }
  0x20   : > { %v274_v34 = vadd.f32 %v273_v29, %v272_v31  ;;  %v309_v29 = vsel %vm257_vm1, %v861_v22, 0.0  ;;  %v871_v31 = vld [vmem:[%s730_s27 + $0xe0] sm:$0xff] }
  0x22   : > { %v276_v37 = vadd.f32 %v275_v32, %v274_v34  ;;  %v311_v34 = vsel %vm257_vm1, %v866_v26, 0.0 }
  0x24   : > { %v278_v40 = vadd.f32 %v277_v35, %v276_v37  ;;  %v876_v35 = vld [vmem:[%s730_s27 + $0xe8] sm:$0xff] }
  0x26   : > { %v280_v43 = vadd.f32 %v279_v38, %v278_v40  ;;  %v313_v38 = vsel %vm257_vm1, %v871_v31, 0.0  ;;  %v881_v40 = vld [vmem:[%s730_s27 + $0xf0] sm:$0xff] }
  0x28   : > { %v282_v46 = vadd.f32 %v281_v41, %v280_v43  ;;  %v315_v43 = vsel %vm257_vm1, %v876_v35, 0.0 }
  0x2a   : > { %v284_v49 = vadd.f32 %v283_v44, %v282_v46  ;;  %v886_v44 = vld [vmem:[%s730_s27 + $0xf8] sm:$0xff] }
  0x2c   : > { %v286_v52 = vadd.f32 %v285_v47, %v284_v49  ;;  %v317_v47 = vsel %vm257_vm1, %v881_v40, 0.0 }
  0x2e   : > { %v288_v55 = vadd.f32 %v287_v50, %v286_v52  ;;  %v319_v50 = vsel %vm257_vm1, %v886_v44, 0.0 }
  0x30   : > { %v290_v58 = vadd.f32 %v289_v53, %v288_v55 }
  0x32   : > { %v292_v61 = vadd.f32 %v291_v56, %v290_v58 }
  0x34   : > { %v294_v0 = vadd.f32 %v293_v59, %v292_v61 }
  0x36   : > { %v296_v3 = vadd.f32 %v295_v62, %v294_v0 }
  0x38   : > { %v298_v10 = vadd.f32 %v297_v1, %v296_v3  ;;  %v406_v1 = vld [vmem:[%s1011_s3] sm:$0x3] }
  0x39   : > { %645 = vmatpush3.msk.msra.mxu1 %vm412_vm2, %v406_v1  ;;  %v331_v3 = vld [vmem:[%s1010_s2] sm:$0x1] }
  0x3a   : > { %v300_v14 = vadd.f32 %v299_v4, %v298_v10 }
  0x3c   : > { %v302_v19 = vadd.f32 %v301_v11, %v300_v14 }
  0x3e   : > { %v304_v23 = vadd.f32 %v303_v16, %v302_v19  ;;  %v407_v16 = vld [vmem:[%s1012_s4] sm:$0x1] }
  0x40   : > { %v306_v28 = vadd.f32 %v305_v20, %v304_v23 }
  0x42   : > { %v308_v32 = vadd.f32 %v307_v25, %v306_v28 }
  0x44   : > { %v310_v37 = vadd.f32 %v309_v29, %v308_v32  ;;  %v492_v32 = vlaneseq }
  0x46   : > { %v312_v41 = vadd.f32 %v311_v34, %v310_v37  ;;  %v493_v34 = vshrl.u32 %v492_v32, 7 }
  0x48   : > { %v314_v46 = vadd.f32 %v313_v38, %v312_v41  ;;  %v494_v37 = vsub.s32 0, %v493_v34 }
  0x4a   : > { %v316_v49 = vadd.f32 %v315_v43, %v314_v46 }
  0x4c   : > { %v318_v52 = vadd.f32 %v317_v47, %v316_v49 }
  0x4e   : > { %v320_v53 = vadd.f32 %v319_v50, %v318_v52 }
  0x50   : > { %v321_v55 = vrot.slane %v320_v53, 4 }
  0x52   : > { %v322_v56 = vadd.f32 %v321_v55, %v320_v53 }
  0x54   : > { %v323_v58 = vrot.slane %v322_v56, 2 }
  0x56   : > { %v324_v59 = vadd.f32 %v323_v58, %v322_v56 }
  0x58   : > { %v325_v61 = vrot.slane %v324_v59, 1 }
  0x5a   : > { %v326_v62 = vadd.f32 %v325_v61, %v324_v59 }
  0x5c   : > { %v328_v0 = vmul.f32 0.00390625, %v326_v62 }
  0x5e   : > { %642 = vmatmul.mubr.msk.f32.vlgmr.msra.gmra.mrb[0].mxu0 %vm257_vm1, %v328_v0 }
 0x131   : > { %v401_v4 = vpop.f32.mrb[0].mxu0 }
 0x132   : > { %v402_v10 = vadd.f32 %v401_v4, %v331_v3  ;;  %v643_v11 = vpop.f32.mrb[1].mxu0 }
 0x134   : > { %v405_v14 = vmax.f32 %v402_v10, 0.0 }
 0x136   : > { %647 = vmatmul.mubr.msk.f32.vlgmr.msra.gmra.mrb[0].mxu1 %vm408_vm3, %v405_v14 }
 0x209   : > { %v482_v19 = vpop.f32.mrb[0].mxu1 }
 0x20a   : > { %v483_v20 = vadd.f32 %v482_v19, %v407_v16  ;;  %v648_v23 = vpop.f32.mrb[1].mxu1 }
 0x20c   : > { %v627_v25 = vmul.f32 -1.442695, %v483_v20 }
 0x20e   : > { %663 = vpow2.f32 %v627_v25 }
 0x218   : > { %v664_v28 = vpop.eup %663 }
 0x219   : > { %v489_v29 = vadd.f32 1.0, %v664_v28 }
 0x21b   : > { %665 = vrcp.f32 %v489_v29 }
 0x225   : > { %v666_v38 = vpop.eup %665 }
 0x226   : > { %v495_v41 = vrot.slane %v666_v38, %v494_v37 }
 0x228   : > { %v496_v43 = vmul.f32 %v495_v41, %v733_v5  ;;  %v497_v46 = vmul.f32 %v495_v41, %v736_v6  ;;  %v498_v47 = vmul.f32 %v495_v41, %v739_v7  ;;  %v499_v49 = vmul.f32 %v495_v41, %v742_v8 }
 0x229   : > { %v500_v50 = vmul.f32 %v495_v41, %v751_v12  ;;  %v501_v52 = vmul.f32 %v495_v41, %v756_v15  ;;  %v502_v53 = vmul.f32 %v495_v41, %v761_v18  ;;  %v503_v55 = vmul.f32 %v495_v41, %v766_v21 }
 0x22a   : > { %v504_v5 = vmul.f32 %v495_v41, %v771_v24  ;;  %v505_v6 = vmul.f32 %v495_v41, %v776_v27  ;;  %v506_v7 = vmul.f32 %v495_v41, %v781_v30  ;;  %v507_v8 = vmul.f32 %v495_v41, %v786_v33  ;;  %528 = vst.msk [vmem:[%s907_s11] sm:$0xff] %vm257_vm1, %v496_v43 }
 0x22b   : > { %529 = vst.msk [vmem:[%s907_s11 + $0x8] sm:$0xff] %vm257_vm1, %v497_v46  ;;  %530 = vst.msk [vmem:[%s907_s11 + $0x10] sm:$0xff] %vm257_vm1, %v498_v47  ;;  %v508_v12 = vmul.f32 %v495_v41, %v791_v36  ;;  %v509_v15 = vmul.f32 %v495_v41, %v796_v39  ;;  %v510_v18 = vmul.f32 %v495_v41, %v801_v42 }
 0x22c   : > { %531 = vst.msk [vmem:[%s907_s11 + $0x18] sm:$0xff] %vm257_vm1, %v499_v49  ;;  %v511_v21 = vmul.f32 %v495_v41, %v806_v45  ;;  %532 = vst.msk [vmem:[%s907_s11 + $0x20] sm:$0xff] %vm257_vm1, %v500_v50  ;;  %v512_v24 = vmul.f32 %v495_v41, %v811_v48  ;;  %v513_v27 = vmul.f32 %v495_v41, %v816_v51 }
 0x22d   : > { %533 = vst.msk [vmem:[%s907_s11 + $0x28] sm:$0xff] %vm257_vm1, %v501_v52  ;;  %534 = vst.msk [vmem:[%s907_s11 + $0x30] sm:$0xff] %vm257_vm1, %v502_v53  ;;  %v514_v30 = vmul.f32 %v495_v41, %v821_v54  ;;  %v515_v33 = vmul.f32 %v495_v41, %v826_v57  ;;  %v516_v36 = vmul.f32 %v495_v41, %v831_v60 }
 0x22e   : > { %535 = vst.msk [vmem:[%s907_s11 + $0x38] sm:$0xff] %vm257_vm1, %v503_v55  ;;  %536 = vst.msk [vmem:[%s907_s11 + $0x40] sm:$0xff] %vm257_vm1, %v504_v5  ;;  %v517_v39 = vmul.f32 %v495_v41, %v836_v63  ;;  %v518_v42 = vmul.f32 %v495_v41, %v841_v2  ;;  %v519_v45 = vmul.f32 %v495_v41, %v846_v9 }
 0x22f   : > { %537 = vst.msk [vmem:[%s907_s11 + $0x48] sm:$0xff] %vm257_vm1, %v505_v6  ;;  %538 = vst.msk [vmem:[%s907_s11 + $0x50] sm:$0xff] %vm257_vm1, %v506_v7  ;;  %v520_v48 = vmul.f32 %v495_v41, %v851_v13  ;;  %v521_v51 = vmul.f32 %v495_v41, %v856_v17  ;;  %v522_v54 = vmul.f32 %v495_v41, %v861_v22 }
 0x230   : > { %539 = vst.msk [vmem:[%s907_s11 + $0x58] sm:$0xff] %vm257_vm1, %v507_v8  ;;  %540 = vst.msk [vmem:[%s907_s11 + $0x60] sm:$0xff] %vm257_vm1, %v508_v12  ;;  %v523_v57 = vmul.f32 %v495_v41, %v866_v26  ;;  %v524_v60 = vmul.f32 %v495_v41, %v871_v31  ;;  %v525_v63 = vmul.f32 %v495_v41, %v876_v35 }
 0x231   : > { %541 = vst.msk [vmem:[%s907_s11 + $0x68] sm:$0xff] %vm257_vm1, %v509_v15  ;;  %542 = vst.msk [vmem:[%s907_s11 + $0x70] sm:$0xff] %vm257_vm1, %v510_v18  ;;  %v526_v2 = vmul.f32 %v495_v41, %v881_v40  ;;  %v527_v9 = vmul.f32 %v495_v41, %v886_v44 }
 0x232   : > { %543 = vst.msk [vmem:[%s907_s11 + $0x78] sm:$0xff] %vm257_vm1, %v511_v21  ;;  %544 = vst.msk [vmem:[%s907_s11 + $0x80] sm:$0xff] %vm257_vm1, %v512_v24 }
 0x233   : > { %545 = vst.msk [vmem:[%s907_s11 + $0x88] sm:$0xff] %vm257_vm1, %v513_v27  ;;  %546 = vst.msk [vmem:[%s907_s11 + $0x90] sm:$0xff] %vm257_vm1, %v514_v30 }
 0x234   : > { %547 = vst.msk [vmem:[%s907_s11 + $0x98] sm:$0xff] %vm257_vm1, %v515_v33  ;;  %548 = vst.msk [vmem:[%s907_s11 + $0xa0] sm:$0xff] %vm257_vm1, %v516_v36 }
 0x235   : > { %549 = vst.msk [vmem:[%s907_s11 + $0xa8] sm:$0xff] %vm257_vm1, %v517_v39  ;;  %550 = vst.msk [vmem:[%s907_s11 + $0xb0] sm:$0xff] %vm257_vm1, %v518_v42 }
 0x236   : > { %551 = vst.msk [vmem:[%s907_s11 + $0xb8] sm:$0xff] %vm257_vm1, %v519_v45  ;;  %552 = vst.msk [vmem:[%s907_s11 + $0xc0] sm:$0xff] %vm257_vm1, %v520_v48 }
 0x237   : > { %553 = vst.msk [vmem:[%s907_s11 + $0xc8] sm:$0xff] %vm257_vm1, %v521_v51  ;;  %554 = vst.msk [vmem:[%s907_s11 + $0xd0] sm:$0xff] %vm257_vm1, %v522_v54 }
 0x238   : > { %555 = vst.msk [vmem:[%s907_s11 + $0xd8] sm:$0xff] %vm257_vm1, %v523_v57  ;;  %556 = vst.msk [vmem:[%s907_s11 + $0xe0] sm:$0xff] %vm257_vm1, %v524_v60 }
 0x239   : > { %557 = vst.msk [vmem:[%s907_s11 + $0xe8] sm:$0xff] %vm257_vm1, %v525_v63  ;;  %558 = vst.msk [vmem:[%s907_s11 + $0xf0] sm:$0xff] %vm257_vm1, %v526_v2 }
 0x23a   : > { %559 = vst.msk [vmem:[%s907_s11 + $0xf8] sm:$0xff] %vm257_vm1, %v527_v9 }
 0x23b PF: > { %s15_s18 = sadd.s32 1, %s673_s18  }
 0x23c   : > { %p12_p4 = scmp.ge.s32.totalorder %s15_s18, 4  }
 0x23e   :  { %14 = sbr.rel (!%p12_p4) target bundleno = 1 (0x1), region = 70 }

</bundles_post_ra>
